<compile_context>
chip_gen: v6e
topology: v6e:2x2x1
jax: 0.10.0
libtpu: 0.0.40
codegen_flags: <defaults>
</compile_context>

<pallas_src>
import functools
import math

import jax
import jax.numpy as jnp
from jax import lax
from jax.experimental import pallas as pl
from jax.experimental.pallas import tpu as pltpu

_LANE = 128


def _smoothing_weights(tgt, C, label_smoothing, shape):
    """q_c = (1-ls)*[c == target] + ls/C, shape (C, S, L) f32."""
    cls = lax.broadcasted_iota(jnp.int32, shape, 0)          # channel index
    onehot = (cls == tgt[None]).astype(jnp.float32)
    return (1.0 - label_smoothing) * onehot + jnp.float32(label_smoothing / C)


def _per_pixel_ce(s, q):
    """Label-smoothed CE per pixel: logsumexp_c(s) - sum_c q_c * s_c.

    s, q: (C, S, L) with channels on the leading (non-vreg) axis, so the
    axis-0 reductions are C-1 elementwise ops over full (S, L) vregs.
    """
    m = jnp.max(s, axis=0)
    e = jnp.exp(s - m[None])
    lse = m + jnp.log(jnp.sum(e, axis=0))
    return lse - jnp.sum(q * s, axis=0)


def _hce_kernel_tpu(seed_ref, x_ref, tgt_ref, out_ref, *, C, num_samples,
                    label_smoothing):
    # Independent PRNG stream per pixel tile (seed and tile id as separate
    # seed words -> no cross-seed stream collisions).
    pltpu.prng_seed(seed_ref[0], pl.program_id(0))

    xb = x_ref[...].astype(jnp.float32)          # (2C, S, L)
    logits = xb[:C]                              # (C, S, L)
    std = jnp.exp(xb[C:])                        # (C, S, L)
    shape = logits.shape
    q = _smoothing_weights(tgt_ref[...], C, label_smoothing, shape)

    two_pi = jnp.float32(2.0 * math.pi)
    inv24 = jnp.float32(1.0 / (1 << 24))

    def draw_pair():
        # Single PRNG draw for both Box-Muller uniforms of the pair.
        bits = pltpu.prng_random_bits((2 * C,) + shape[1:])
        u = (bits & 0xFFFFFF).astype(jnp.float32) * inv24    # uniform [0, 1)
        u1, u2 = u[:C], u[C:]
        r = jnp.sqrt(-2.0 * jnp.log(1.0 - u1))               # 1-u1 in (0, 1]
        th = two_pi * u2
        return r * jnp.cos(th), r * jnp.sin(th)              # two indep N(0,1)

    def body(_, acc):
        e1, e2 = draw_pair()
        acc = acc + _per_pixel_ce(logits + e1 * std, q)
        acc = acc + _per_pixel_ce(logits + e2 * std, q)
        return acc

    acc = lax.fori_loop(0, num_samples // 2, body,
                        jnp.zeros(shape[1:], jnp.float32), unroll=2)
    if num_samples % 2:                                      # static remainder
        e1, _ = draw_pair()
        acc = acc + _per_pixel_ce(logits + e1 * std, q)

    out_ref[...] = acc * jnp.float32(1.0 / num_samples)


def _hce_kernel_noise_input(x_ref, tgt_ref, eps_ref, out_ref, *, C,
                            num_samples, label_smoothing):
    """Interpret-safe variant: gaussian noise is a kernel input."""
    xb = x_ref[...].astype(jnp.float32)
    logits = xb[:C]
    std = jnp.exp(xb[C:])
    shape = logits.shape
    q = _smoothing_weights(tgt_ref[...], C, label_smoothing, shape)

    def body(s, acc):
        return acc + _per_pixel_ce(logits + eps_ref[s] * std, q)

    acc = lax.fori_loop(0, num_samples, body, jnp.zeros(shape[1:], jnp.float32))
    out_ref[...] = acc * jnp.float32(1.0 / num_samples)


def heteroscedastic_cross_entropy(x, target, *, num_samples=100,
                                  label_smoothing=0.0, seed=0,
                                  block_pixels=8):
    """x: (N, 2C, H, W); target: (N, H, W) int.  Returns scalar f32 loss."""
    N, twoC, H, W = x.shape
    C = twoC // 2
    P = N * H * W

    # Channels-leading, flat-pixel layout; pixels pad up to full (S, 128) tiles
    # (padded pixels are computed but discarded in the final mean).
    x_t = jnp.transpose(x, (1, 0, 2, 3)).reshape(twoC, P)
    tgt = target.reshape(P).astype(jnp.int32)

    n_lane_groups = pl.cdiv(P, _LANE)
    S = min(block_pixels, n_lane_groups)
    n_tiles = pl.cdiv(n_lane_groups, S)
    Pb = n_tiles * S
    P_pad = Pb * _LANE
    if P_pad != P:
        x_t = jnp.pad(x_t, ((0, 0), (0, P_pad - P)))
        tgt = jnp.pad(tgt, (0, P_pad - P))
    x3 = x_t.reshape(twoC, Pb, _LANE)
    tgt2 = tgt.reshape(Pb, _LANE)

    out_shape = jax.ShapeDtypeStruct((Pb, _LANE), jnp.float32)

    if jax.default_backend() == "tpu":
        kern = functools.partial(_hce_kernel_tpu, C=C, num_samples=num_samples,
                                 label_smoothing=label_smoothing)
        per_pixel = pl.pallas_call(
            kern,
            out_shape=out_shape,
            grid_spec=pltpu.PrefetchScalarGridSpec(
                num_scalar_prefetch=1,
                grid=(n_tiles,),
                in_specs=[
                    pl.BlockSpec((twoC, S, _LANE), lambda i, _: (0, i, 0)),
                    pl.BlockSpec((S, _LANE), lambda i, _: (i, 0)),
                ],
                out_specs=pl.BlockSpec((S, _LANE), lambda i, _: (i, 0)),
            ),
            compiler_params=pltpu.CompilerParams(
                dimension_semantics=("parallel",)),
        )(jnp.array([seed], dtype=jnp.int32), x3, tgt2)
    else:
        # No TPU backend (CPU interpret fallback): the TPU hardware PRNG has
        # no CPU lowering, so feed pre-drawn gaussian noise instead.
        eps = jax.random.normal(jax.random.PRNGKey(seed),
                                (num_samples, C, Pb, _LANE), dtype=jnp.float32)
        kern = functools.partial(_hce_kernel_noise_input, C=C,
                                 num_samples=num_samples,
                                 label_smoothing=label_smoothing)
        per_pixel = pl.pallas_call(
            kern,
            out_shape=out_shape,
            grid=(n_tiles,),
            in_specs=[
                pl.BlockSpec((twoC, S, _LANE), lambda i: (0, i, 0)),
                pl.BlockSpec((S, _LANE), lambda i: (i, 0)),
                pl.BlockSpec((num_samples, C, S, _LANE),
                             lambda i: (0, 0, i, 0)),
            ],
            out_specs=pl.BlockSpec((S, _LANE), lambda i: (i, 0)),
        )(x3, tgt2, eps)

    # Mean over the real (unpadded) pixels == torch CE 'mean' reduction; the
    # MC-sample average already happened inside the kernel.
    return jnp.sum(per_pixel.reshape(-1)[:P]) / P


def _mc_reference_loss(x, target, key, *, num_samples, label_smoothing):
    """Pure-JAX Monte-Carlo reference (independent noise stream)."""
    C = x.shape[1] // 2
    logits, log_std = x[:, :C], x[:, C:]
    std = jnp.exp(log_std)
    onehot = jax.nn.one_hot(target, C, axis=1)                # (N, C, H, W)
    q = (1.0 - label_smoothing) * onehot + label_smoothing / C

    def one(k):
        eps = jax.random.normal(k, std.shape, dtype=jnp.float32)
        logp = jax.nn.log_softmax(logits + eps * std, axis=1)
        return -jnp.mean(jnp.sum(q * logp, axis=1))

    return jnp.mean(jax.vmap(one)(jax.random.split(key, num_samples)))


if __name__ == "__main__":
    key = jax.random.PRNGKey(0)
    kx, kt = jax.random.split(key)
    N, C, H, W = 2, 4, 16, 16
    x = jax.random.normal(kx, (N, 2 * C, H, W), dtype=jnp.float32)
    x = x.at[:, C:].set(0.5 * x[:, C:] - 1.0)     # moderate log-std
    target = jax.random.randint(kt, (N, H, W), 0, C)

    num_samples, label_smoothing = 100, 0.1
    loss = heteroscedastic_cross_entropy(
        x, target, num_samples=num_samples, label_smoothing=label_smoothing,
        seed=0)
    loss = jax.block_until_ready(loss)

    assert loss.shape == ()
    assert bool(jnp.isfinite(loss))

    # Independent-noise MC reference estimates the same expectation; the MC
    # standard error at these shapes is ~1e-3, so 5e-2 is a very safe bound.
    ref = _mc_reference_loss(x, target, jax.random.PRNGKey(1234),
                             num_samples=200, label_smoothing=label_smoothing)
    assert bool(jnp.abs(loss - ref) < 5e-2), (float(loss), float(ref))

    print("KERNEL_OK")
</pallas_src>

<mosaic_0001>
module attributes {stable_mosaic.version = 11 : i64} {
  func.func @_hce_kernel_noise_input(%arg0: i32, %arg1: memref<8x4x128xf32, #tpu.memory_space<vmem>>, %arg2: memref<4x128xi32, #tpu.memory_space<vmem>>, %arg3: memref<100x4x4x128xf32, #tpu.memory_space<vmem>>, %arg4: memref<4x128xf32, #tpu.memory_space<vmem>>) attributes {dimension_semantics = [#tpu.dimension_semantics<arbitrary>], iteration_bounds = array<i64: 1>, scalar_prefetch = 0 : i64, scratch_operands = 0 : i64, tpu.core_type = #tpu.core_type<tc>, window_params = [{transform_indices = @transform_0, window_bounds = array<i64: 8, 4, 128>}, {transform_indices = @transform_1, window_bounds = array<i64: 4, 128>}, {transform_indices = @transform_2, window_bounds = array<i64: 100, 4, 4, 128>}, {transform_indices = @transform_3, window_bounds = array<i64: 4, 128>}]} {
    %c0 = arith.constant 0 : index
    %c0_0 = arith.constant 0 : index
    %c0_1 = arith.constant 0 : index
    %0 = vector.load %arg1[%c0, %c0_0, %c0_1] : memref<8x4x128xf32, #tpu.memory_space<vmem>>, vector<8x4x128xf32>
    %1 = vector.extract_strided_slice %0 {offsets = [0, 0, 0], sizes = [4, 4, 128], strides = [1, 1, 1]} : vector<8x4x128xf32> to vector<4x4x128xf32>
    %2 = vector.extract_strided_slice %0 {offsets = [4, 0, 0], sizes = [4, 4, 128], strides = [1, 1, 1]} : vector<8x4x128xf32> to vector<4x4x128xf32>
    %3 = math.exp %2 : vector<4x4x128xf32>
    %c0_2 = arith.constant 0 : index
    %c0_3 = arith.constant 0 : index
    %4 = vector.load %arg2[%c0_2, %c0_3] : memref<4x128xi32, #tpu.memory_space<vmem>>, vector<4x128xi32>
    %5 = tpu.iota {dimensions = array<i32: 0>} : vector<4x4x128xi32>
    %6 = vector.shape_cast %4 : vector<4x128xi32> to vector<1x4x128xi32>
    %7 = vector.broadcast %6 : vector<1x4x128xi32> to vector<4x4x128xi32>
    %8 = arith.cmpi eq, %5, %7 : vector<4x4x128xi32>
    %9 = arith.extui %8 : vector<4x4x128xi1> to vector<4x4x128xi32>
    %10 = arith.sitofp %9 : vector<4x4x128xi32> to vector<4x4x128xf32>
    %cst = arith.constant 0.899999976 : f32
    %11 = vector.broadcast %cst : f32 to vector<4x4x128xf32>
    %12 = arith.mulf %11, %10 : vector<4x4x128xf32>
    %cst_4 = arith.constant 2.500000e-02 : f32
    %13 = vector.broadcast %cst_4 : f32 to vector<4x4x128xf32>
    %14 = arith.addf %12, %13 : vector<4x4x128xf32>
    %cst_5 = arith.constant 0.000000e+00 : f32
    %15 = vector.broadcast %cst_5 : f32 to vector<4x128xf32>
    %c0_i32 = arith.constant 0 : i32
    %c100_i32 = arith.constant 100 : i32
    %16 = arith.addi %c0_i32, %c100_i32 : i32
    %c1_i32 = arith.constant 1 : i32
    %17 = scf.for %arg5 = %c0_i32 to %16 step %c1_i32 iter_args(%arg6 = %15) -> (vector<4x128xf32>)  : i32 {
      %21 = arith.index_cast %arg5 : i32 to index
      %c0_10 = arith.constant 0 : index
      %c0_11 = arith.constant 0 : index
      %c0_12 = arith.constant 0 : index
      %22 = vector.load %arg3[%21, %c0_10, %c0_11, %c0_12] : memref<100x4x4x128xf32, #tpu.memory_space<vmem>>, vector<1x4x4x128xf32>
      %23 = vector.shape_cast %22 : vector<1x4x4x128xf32> to vector<4x4x128xf32>
      %24 = arith.mulf %23, %3 : vector<4x4x128xf32>
      %25 = arith.addf %1, %24 : vector<4x4x128xf32>
      %cst_13 = arith.constant dense<0xFF800000> : vector<4x128xf32>
      %26 = vector.multi_reduction <maximumf>, %25, %cst_13 [0] : vector<4x4x128xf32> to vector<4x128xf32>
      %27 = vector.shape_cast %26 : vector<4x128xf32> to vector<1x4x128xf32>
      %28 = vector.broadcast %27 : vector<1x4x128xf32> to vector<4x4x128xf32>
      %29 = arith.subf %25, %28 : vector<4x4x128xf32>
      %30 = math.exp %29 : vector<4x4x128xf32>
      %cst_14 = arith.constant dense<0.000000e+00> : vector<4x128xf32>
      %31 = vector.multi_reduction <add>, %30, %cst_14 [0] : vector<4x4x128xf32> to vector<4x128xf32>
      %32 = math.log %31 : vector<4x128xf32>
      %33 = arith.addf %26, %32 : vector<4x128xf32>
      %34 = arith.mulf %14, %25 : vector<4x4x128xf32>
      %cst_15 = arith.constant dense<0.000000e+00> : vector<4x128xf32>
      %35 = vector.multi_reduction <add>, %34, %cst_15 [0] : vector<4x4x128xf32> to vector<4x128xf32>
      %36 = arith.subf %33, %35 : vector<4x128xf32>
      %37 = arith.addf %arg6, %36 : vector<4x128xf32>
      scf.yield %37 : vector<4x128xf32>
    }
    %c100_i32_6 = arith.constant 100 : i32
    %cst_7 = arith.constant 0.00999999977 : f32
    %18 = vector.broadcast %cst_7 : f32 to vector<4x128xf32>
    %19 = arith.mulf %17, %18 : vector<4x128xf32>
    %c0_8 = arith.constant 0 : index
    %c0_9 = arith.constant 0 : index
    %20 = vector.load %arg4[%c0_8, %c0_9] : memref<4x128xf32, #tpu.memory_space<vmem>>, vector<4x128xf32>
    tpu.vector_store %arg4[%c0_8, %c0_9], %19 {strides = array<i32>} : memref<4x128xf32, #tpu.memory_space<vmem>>, vector<4x128xf32>,
    return
  }
  func.func @transform_0(%arg0: i32) -> (i32, i32, i32) {
    %c0_i32 = arith.constant 0 : i32
    %c0_i32_0 = arith.constant 0 : i32
    %c0_i32_1 = arith.constant 0 : i32
    return %c0_i32, %arg0, %c0_i32_0 : i32, i32, i32
  }
  func.func @transform_1(%arg0: i32) -> (i32, i32) {
    %c0_i32 = arith.constant 0 : i32
    %c0_i32_0 = arith.constant 0 : i32
    return %arg0, %c0_i32 : i32, i32
  }
  func.func @transform_2(%arg0: i32) -> (i32, i32, i32, i32) {
    %c0_i32 = arith.constant 0 : i32
    %c0_i32_0 = arith.constant 0 : i32
    %c0_i32_1 = arith.constant 0 : i32
    %c0_i32_2 = arith.constant 0 : i32
    return %c0_i32, %c0_i32_0, %arg0, %c0_i32_1 : i32, i32, i32, i32
  }
  func.func @transform_3(%arg0: i32) -> (i32, i32) {
    %c0_i32 = arith.constant 0 : i32
    %c0_i32_0 = arith.constant 0 : i32
    return %arg0, %c0_i32 : i32, i32
  }
}

</mosaic_0001>

<bundles_post_ra>
// kernel: tpu_custom_call.1
= control target key start
LH: loop header
LB: loop body
LE: loop exit
PB: predicated region body
PF: predicated region fallthrough
CT: control target
= control target key end

     0   :  { %8 = vsyncpa [#allocation3], 0  ;;  %s435_s0 = inlined_call_operand.hbm [shape: f32[8,4,128], index: 0, kind: input, shape index: {}]   ;;  %s436_s1 = inlined_call_operand.hbm [shape: s32[4,128], index: 1, kind: input, shape index: {}]   ;;  %s437_s2 = inlined_call_operand.hbm [shape: f32[100,4,4,128], index: 2, kind: input, shape index: {}]   ;;  %s438_s3 = inlined_call_operand.hbm [shape: f32[4,128], index: 3, kind: output, shape index: {}]  }
   0x1   :  { %9 = vsyncpa [#allocation6], 0 }
   0x2   :  { %10 = vsyncpa [#allocation4], 0  ;;  %s331_s12 = smov [#allocation5]   ;;  %s332_s14 = smov [#allocation2]  }
   0x3   :  { %s29_s13 = sshll.u32 %s331_s12, 4  ;;  %s16_s15 = sshll.u32 %s332_s14, 4  ;;  %s30_s13 = int_to_ptr.vmem [resolvable:$true] %s29_s13  ;;  %s17_s15 = int_to_ptr.vmem [resolvable:$true] %s16_s15 }
   0x4   :  { %s237_s16 = scalar_lea.vmem %s30_s13, 64  ;;  %p242_p1 = scmp.lt.s32.totalorder %s30_s13, %s30_s13 }
   0x5   :  { %p238_p0 = scmp.ne.s32.totalorder %s30_s13, %s237_s16  ;;  %p243_p2 = scmp.lt.s32.totalorder %s237_s16, %s237_s16 }
   0x7   :  { %p244_p3 = por %p243_p2, %p242_p1 }
   0x9   :  { %p245_p4 = pnand %p244_p3, %p238_p0 }
   0xb   :  { %248 = shalt.err (!%p245_p4)
}
   0xc   :  { %32 = dma.hbm_to_vmem [thread:$0]  %s436_s1, 64, %s30_s13, [#allocation6]  }
   0xd   :  { %s257_s19 = scalar_lea.vmem %s17_s15, 512  ;;  %p262_p6 = scmp.lt.s32.totalorder %s17_s15, %s17_s15 }
   0xe   :  { %p258_p5 = scmp.ne.s32.totalorder %s17_s15, %s257_s19  ;;  %p263_p7 = scmp.lt.s32.totalorder %s257_s19, %s257_s19 }
  0x10   :  { %p264_p8 = por %p263_p7, %p262_p6 }
  0x12   :  { %p265_p9 = pnand %p264_p8, %p258_p5 }
  0x14   :  { %268 = shalt.err (!%p265_p9)
}
  0x15   :  { %s333_s20 = smov 64   ;;  %s334_s21 = smov 4  }
  0x16   :  { %22 = dma.hbm_to_vmem [thread:$0]  %s435_s0, 512, %s17_s15, [#allocation3], %s333_s20, %s333_s20, %s334_s21  }
  0x17   :  { %s335_s24 = smov [#allocation7]  }
  0x18   :  { %s38_s25 = sshll.u32 %s335_s24, 4  ;;  %s39_s25 = int_to_ptr.vmem [resolvable:$true] %s38_s25 }
  0x19   :  { %s277_s26 = scalar_lea.vmem %s39_s25, 25600  ;;  %p282_p11 = scmp.lt.s32.totalorder %s39_s25, %s39_s25 }
  0x1a   :  { %p278_p10 = scmp.ne.s32.totalorder %s39_s25, %s277_s26  ;;  %p283_p12 = scmp.lt.s32.totalorder %s277_s26, %s277_s26 }
  0x1c   :  { %p284_p13 = por %p283_p12, %p282_p11 }
  0x1e   :  { %p285_p0 = pnand %p284_p13, %p278_p10 }
  0x20   :  { %288 = shalt.err (!%p285_p0)
}
  0x21   :  { %44 = dma.hbm_to_vmem [thread:$0]  %s437_s2, 25600, %s39_s25, [#allocation6], %s333_s20, %s333_s20, %s334_s21  }
  0x22   :  { %317 = dma.done.wait [#allocation3], 512  }
  0x23   :  { %318 = vsyncadd [#allocation3], 4294966784 }
  0x24   :  { %319 = dma.done.wait [#allocation6], 25664  }
  0x25   :  { %320 = vsyncadd [#allocation6], 4294941632  ;;  %v367_v0 = vld [vmem:[#allocation2] sm:$0xf]  ;;  %v369_v1 = vld [vmem:[#allocation2 + $0x4] sm:$0xf] }
  0x26   :  { %v371_v2 = vld [vmem:[#allocation2 + $0x8] sm:$0xf]  ;;  %v373_v3 = vld [vmem:[#allocation2 + $0xc] sm:$0xf]  ;;  %v58_v4 = vld [vmem:[#allocation2 + $0x10] sm:$0xf] }
  0x27   :  { %v59_v5 = vld [vmem:[#allocation2 + $0x14] sm:$0xf]  ;;  %v60_v6 = vld [vmem:[#allocation2 + $0x18] sm:$0xf]  ;;  %v61_v7 = vld [vmem:[#allocation2 + $0x1c] sm:$0xf] }
  0x28   :  { %v62_v8 = vmul.f32 1.442695, %v58_v4  ;;  %v64_v9 = vmul.f32 1.442695, %v59_v5  ;;  %v66_v10 = vmul.f32 1.442695, %v60_v6 }
  0x29   :  { %v68_v11 = vmul.f32 1.442695, %v61_v7  ;;  %v70_v12 = vld [vmem:[#allocation5] sm:$0xf]  ;;  %v336_v13 = vmov 0.0   ;;  %v391_v30 = vmov 0.0  }
  0x2a   :  { %211 = vpow2.f32 %v62_v8  ;;  %vm71_vm0 = vcmp.eq.s32.totalorder %v70_v12, 0  ;;  %vm72_vm1 = vcmp.eq.s32.totalorder %v70_v12, 1  ;;  %vm73_vm2 = vcmp.eq.s32.totalorder %v70_v12, 2  ;;  %s393_s0 = smov 0  }
  0x2b   :  { %213 = vpow2.f32 %v64_v9  ;;  %vm74_vm3 = vcmp.eq.s32.totalorder %v70_v12, 3  ;;  %v183_v14 = vsel %vm71_vm0, 1.0, %v336_v13  ;;  %v184_v15 = vsel %vm72_vm1, 1.0, %v336_v13 }
  0x2c   :  { %215 = vpow2.f32 %v66_v10  ;;  %v185_v16 = vsel %vm73_vm2, 1.0, %v336_v13  ;;  %v186_v17 = vsel %vm74_vm3, 1.0, %v336_v13  ;;  %v83_v18 = vmul.f32 0.9, %v183_v14 }
  0x2d   :  { %217 = vpow2.f32 %v68_v11  ;;  %v84_v19 = vmul.f32 0.9, %v184_v15  ;;  %v85_v20 = vmul.f32 0.9, %v185_v16  ;;  %v86_v21 = vmul.f32 0.9, %v186_v17 }
  0x2e   :  { %v375_v22 = vadd.f32 0.025, %v83_v18 }
  0x2f   :  { %v377_v23 = vadd.f32 0.025, %v84_v19  ;;  %v379_v24 = vadd.f32 0.025, %v85_v20  ;;  %v381_v25 = vadd.f32 0.025, %v86_v21 }
  0x37   :  { %v383_v26 = vpop.eup %211 }
  0x38   :  { %v385_v27 = vpop.eup %213 }
  0x39   :  { %v387_v28 = vpop.eup %215 }
  0x3a   :  { %v389_v29 = vpop.eup %217 }
  0x3b LB: > { %s187_s2 = sshll.u32 %s329_s0, 4  ;;  %vm112_vm4 = vcmask 1043456   ;;  %s96_s0 = sadd.s32 1, %s329_s0   ;;  %s329_s0 = sphi %s393_s0, %s96_s0   ;;  %v325_v30 = vphi %v391_v30, %v439_v30  }
  0x3c   : > { %s99_s28 = scalar_lea.vmem [#allocation7], %s187_s2  ;;  %p93_p1 = scmp.ge.s32.totalorder %s96_s0, 100  }
  0x3d   : > { %v100_v31 = vld [vmem:[%s99_s28] sm:$0xf]  ;;  %v101_v32 = vld [vmem:[%s99_s28 + $0x4] sm:$0xf]  ;;  %v102_v33 = vld [vmem:[%s99_s28 + $0x8] sm:$0xf] }
  0x3e   : > { %v103_v34 = vld [vmem:[%s99_s28 + $0xc] sm:$0xf]  ;;  %v104_v35 = vmul.f32 %v383_v26, %v100_v31  ;;  %v105_v36 = vmul.f32 %v385_v27, %v101_v32  ;;  %v106_v37 = vmul.f32 %v387_v28, %v102_v33  ;;  %s337_s29 = smov (%p93_p1), [#allocation8]  }
  0x3f   : > { %v107_v38 = vmul.f32 %v389_v29, %v103_v34  ;;  %s163_s30 = sshll.u32 (%p93_p1), %s337_s29, 4  ;;  %s164_s30 = int_to_ptr.vmem [resolvable:$true] %s163_s30 }
  0x40   : > { %v108_v39 = vadd.f32 %v104_v35, %v367_v0  ;;  %v109_v40 = vadd.f32 %v105_v36, %v369_v1  ;;  %v110_v41 = vadd.f32 %v106_v37, %v371_v2  ;;  %s289_s4 = scalar_lea.vmem (%p93_p1), %s164_s30, 64  ;;  %p294_p3 = scmp.lt.s32.totalorder (%p93_p1), %s164_s30, %s164_s30 }
  0x41   : > { %v111_v42 = vadd.f32 %v107_v38, %v373_v3  ;;  %p290_p2 = scmp.ne.s32.totalorder (%p93_p1), %s164_s30, %s289_s4  ;;  %p295_p4 = scmp.lt.s32.totalorder (%p93_p1), %s289_s4, %s289_s4 }
  0x42   : > { %v113_v43 = vsel %vm112_vm4, %v108_v39, -inf  ;;  %v114_v44 = vsel %vm112_vm4, %v109_v40, -inf  ;;  %v115_v45 = vsel %vm112_vm4, %v110_v41, -inf  ;;  %v142_v9 = vmul.f32 %v108_v39, %v375_v22 }
  0x43   : > { %v116_v46 = vsel %vm112_vm4, %v111_v42, -inf  ;;  %v117_v47 = vmax.f32 %v113_v43, %v114_v44  ;;  %v143_v10 = vmul.f32 %v109_v40, %v377_v23  ;;  %v144_v11 = vmul.f32 %v110_v41, %v379_v24  ;;  %p296_p5 = por (%p93_p1), %p295_p4, %p294_p3 }
  0x44   : > { %v118_v48 = vmax.f32 %v115_v45, %v116_v46  ;;  %v146_v12 = vsel %vm112_vm4, %v142_v9, 0.0  ;;  %v145_v15 = vmul.f32 %v111_v42, %v381_v25 }
  0x45   : > { %v147_v13 = vsel %vm112_vm4, %v143_v10, 0.0  ;;  %v149_v16 = vsel %vm112_vm4, %v144_v11, 0.0  ;;  %p297_p6 = pnand (%p93_p1), %p296_p5, %p290_p2 }
  0x46   : > { %v119_v49 = vmax.f32 %v117_v47, %v118_v48  ;;  %v148_v14 = vadd.f32 %v147_v13, %v146_v12  ;;  %v151_v18 = vsel %vm112_vm4, %v145_v15, 0.0 }
  0x48   : > { %v120_v50 = vsub.f32 %v108_v39, %v119_v49  ;;  %v121_v51 = vsub.f32 %v109_v40, %v119_v49  ;;  %v122_v52 = vsub.f32 %v110_v41, %v119_v49  ;;  %v123_v53 = vsub.f32 %v111_v42, %v119_v49 }
  0x49   : > { %v150_v17 = vadd.f32 %v149_v16, %v148_v14 }
  0x4a   : > { %v124_v54 = vmul.f32 1.442695, %v120_v50  ;;  %v126_v55 = vmul.f32 1.442695, %v121_v51  ;;  %v128_v56 = vmul.f32 1.442695, %v122_v52 }
  0x4b   : > { %v130_v57 = vmul.f32 1.442695, %v123_v53  ;;  %v152_v21 = vadd.f32 %v151_v18, %v150_v17 }
  0x4c   : > { %219 = vpow2.f32 %v124_v54 }
  0x4d   : > { %221 = vpow2.f32 %v126_v55 }
  0x4e   : > { %223 = vpow2.f32 %v128_v56 }
  0x4f   : > { %225 = vpow2.f32 %v130_v57 }
  0x59   : > { %v220_v58 = vpop.eup %219 }
  0x5a   : > { %v222_v59 = vpop.eup %221  ;;  %v132_v60 = vsel %vm112_vm4, %v220_v58, 0.0 }
  0x5b   : > { %v224_v61 = vpop.eup %223  ;;  %v133_v62 = vsel %vm112_vm4, %v222_v59, 0.0 }
  0x5c   : > { %v226_v63 = vpop.eup %225  ;;  %v134_v4 = vadd.f32 %v133_v62, %v132_v60  ;;  %v135_v5 = vsel %vm112_vm4, %v224_v61, 0.0 }
  0x5d   : > { %v137_v6 = vsel %vm112_vm4, %v226_v63, 0.0 }
  0x5e   : > { %v136_v7 = vadd.f32 %v135_v5, %v134_v4 }
  0x60   : > { %v138_v8 = vadd.f32 %v137_v6, %v136_v7 }
  0x62   : > { %227 = vlog2.f32 %v138_v8 }
  0x6f   : > { %v228_v19 = vpop.eup %227 }
  0x70   : > { %v140_v20 = vmul.f32 0.6931472, %v228_v19 }
  0x72   : > { %v141_v31 = vadd.f32 %v140_v20, %v119_v49 }
  0x74   : > { %v153_v32 = vsub.f32 %v141_v31, %v152_v21  ;;  %95 = sbr.rel (!%p93_p1) target bundleno = 59 (0x3b), region = 52 }
  0x76   : > { %v154_v33 = vadd.f32 %v325_v30, %v153_v32  }
  0x78   : > { %v439_v30 = vmov %v154_v33  ;;  %v155_v34 = vmul.f32 (%p93_p1), 0.01, %v154_v33 }
  0x7a   :  { %156 = vst [vmem:[#allocation8] sm:$0xf] %v155_v34 }
  0x7b   :  { %300 = shalt.err (!%p297_p6)
}
  0x7c   :  { %166 = dma.vmem_to_hbm [thread:$0]  %s164_s30, 64, %s438_s3, [#allocation4]  }
  0x7d   :  { %321 = dma.done.wait [#allocation4], 64  }
  0x7e   :  { %322 = vsyncadd [#allocation4], 4294967232 }
  0x7f   :  { %170 = vsyncpa [#allocation3], 1 }
  0x80   :  { %171 = vsyncpa [#allocation6], 1 }
  0x81   :  { %172 = vsyncpa [#allocation4], 1 }

</bundles_post_ra>
